<compile_context>
chip_gen: v6e
topology: v6e:2x2x1
jax: 0.10.0
libtpu: 0.0.40
codegen_flags: <defaults>
</compile_context>

<pallas_src>
import math
import jax
import jax.numpy as jnp
from jax import lax
from jax.experimental import pallas as pl
from jax.experimental.pallas import tpu as pltpu

N_INPUTS = 784
KP = 896                             # 784 lane-padded to 7*128 (fc1 K dimension)
H1, H2, OUT = 20, 16, 10             # logical (PyTorch) feature widths
LANE = 128
H1P, H2P, OUTP = LANE, LANE, LANE    # lane-padded widths used inside the kernel


def _round_up(x, m):
    return ((x + m - 1) // m) * m


def _hw_budgets():
    """(vmem_limit_bytes, max_batch_tile) sized per TPU generation."""
    try:
        phys = int(pltpu.get_tpu_info().vmem_capacity_bytes)
    except Exception:
        phys = 64 * 1024 * 1024                      # conservative fallback (v7x-sized)
    vmem_limit = min(phys - 16 * 1024 * 1024, 96 * 1024 * 1024)   # 48 MiB on v7x, 96 MiB on v5e/v6e
    max_tile = 8192 if phys >= 100 * 1024 * 1024 else 4096        # v5e/v6e : v7x
    return vmem_limit, max_tile


def mlp_softmax_kernel(x_ref, w1_ref, b1_ref, w2_ref, b2_ref, w3_ref, b3_ref, o_ref):
    # fc1 + relu (bf16 operands on the MXU, f32 accumulate); bf16 right after relu keeps
    # any spilled intermediate half-size (v7x VMEM budget).
    h1 = jnp.dot(x_ref[...], w1_ref[...], preferred_element_type=jnp.float32) + b1_ref[...]
    h1 = jnp.maximum(h1, 0.0).astype(jnp.bfloat16)

    # fc2 + relu
    h2 = jnp.dot(h1, w2_ref[...], preferred_element_type=jnp.float32) + b2_ref[...]
    h2 = jnp.maximum(h2, 0.0).astype(jnp.bfloat16)

    # fc3 (lane-padded to 128) + softmax over the real 10 classes
    logits = jnp.dot(h2, w3_ref[...], preferred_element_type=jnp.float32) + b3_ref[...]
    col = lax.broadcasted_iota(jnp.int32, logits.shape, 1)
    logits = jnp.where(col < OUT, logits, -jnp.inf)          # kill padded classes

    m = jnp.max(logits, axis=-1, keepdims=True)
    e = jnp.exp(logits - m)
    denom = jnp.sum(e, axis=-1, keepdims=True)
    inv = pl.reciprocal(denom)                               # exact: rows sum to 1 tightly
    o_ref[...] = (e * inv).astype(o_ref.dtype)


def torch_nn_forward(x, params, tile_b=None, out_dtype=jnp.bfloat16):
    """x: (B, 784) float32.  params: lane-padded, pre-transposed weights + biases.

    Returns (B, 10) softmax probabilities (out_dtype, default bf16 for half the output
    HBM traffic; pass jnp.float32 for strict parity with the f32 PyTorch reference).
    Call this inside the same jit as the consumer so the pad/cast/slice fuse.
    """
    B = x.shape[0]
    vmem_limit, max_tile = _hw_budgets()
    if tile_b is None:
        tile_b = max_tile

    # Pad batch only to a multiple of 8 (sublane quantum); the grid handles a ragged last
    # tile via pl.cdiv, so padding waste is at most 7 rows regardless of tile size.
    Bp = _round_up(B, 8)
    tb = min(_round_up(tile_b, 8), Bp)
    grid = (pl.cdiv(Bp, tb),)

    # Pad to (Bp, 896) and cast to bf16 in one fused pass (under jit).
    xp = jnp.pad(x, ((0, Bp - B), (0, KP - N_INPUTS))).astype(jnp.bfloat16)

    w1, b1 = params["w1"], params["b1"]
    w2, b2 = params["w2"], params["b2"]
    w3, b3 = params["w3"], params["b3"]

    # Weights/biases: DMA'd once, resident in VMEM, single-buffered (constant index_map).
    resident = lambda a: pl.BlockSpec(a.shape, lambda i: (0, 0),
                                      pipeline_mode=pl.Buffered(1))

    weight_bytes = sum(int(a.size) * a.dtype.itemsize for a in (w1, b1, w2, b2, w3, b3))
    out_itemsize = jnp.dtype(out_dtype).itemsize
    cost = pl.CostEstimate(
        flops=2 * Bp * (KP * H1P + H1P * H2P + H2P * OUTP),
        transcendentals=Bp * OUTP,
        bytes_accessed=Bp * KP * 2 + Bp * OUTP * out_itemsize + weight_bytes,
    )

    out = pl.pallas_call(
        mlp_softmax_kernel,
        out_shape=jax.ShapeDtypeStruct((Bp, OUTP), out_dtype),
        grid=grid,
        in_specs=[
            pl.BlockSpec((tb, KP), lambda i: (i, 0)),
            resident(w1), resident(b1),
            resident(w2), resident(b2),
            resident(w3), resident(b3),
        ],
        out_specs=pl.BlockSpec((tb, OUTP), lambda i: (i, 0)),
        compiler_params=pltpu.CompilerParams(
            dimension_semantics=("parallel",),
            vmem_limit_bytes=vmem_limit,
        ),
        cost_estimate=cost,
    )(xp, w1, b1, w2, b2, w3, b3)

    # Lazy under jit: fuses into the consumer instead of an extra HBM pass.
    return out[:B, :OUT]


# ---------------- init (matches PyTorch TorchNN) ----------------

def xavier_uniform(key, fan_in, fan_out):
    # torch.nn.init.xavier_uniform_ on a (fan_out, fan_in) weight, returned transposed.
    bound = math.sqrt(6.0 / (fan_in + fan_out))
    return jax.random.uniform(key, (fan_in, fan_out), jnp.float32, -bound, bound)


def linear_bias(key, fan_in, fan_out):
    # PyTorch nn.Linear default bias init: U(-1/sqrt(fan_in), 1/sqrt(fan_in))
    bound = 1.0 / math.sqrt(fan_in)
    return jax.random.uniform(key, (1, fan_out), jnp.float32, -bound, bound)


def _pad_to(a, shape):
    return jnp.pad(a, [(0, t - s) for s, t in zip(a.shape, shape)])


def init_params(key):
    k = jax.random.split(key, 6)
    w1 = xavier_uniform(k[0], N_INPUTS, H1)
    b1 = linear_bias(k[1], N_INPUTS, H1)
    w2 = xavier_uniform(k[2], H1, H2)
    b2 = linear_bias(k[3], H1, H2)
    w3 = xavier_uniform(k[4], H2, OUT)
    b3 = linear_bias(k[5], H2, OUT)
    # zero-pad every feature (and fc1 K) dim to a multiple of 128 lanes; padded
    # rows/cols contribute exactly 0 to the real outputs.
    return {
        "w1": _pad_to(w1, (KP, H1P)).astype(jnp.bfloat16),
        "b1": _pad_to(b1, (1, H1P)),
        "w2": _pad_to(w2, (H1P, H2P)).astype(jnp.bfloat16),
        "b2": _pad_to(b2, (1, H2P)),
        "w3": _pad_to(w3, (H2P, OUTP)).astype(jnp.bfloat16),
        "b3": _pad_to(b3, (1, OUTP)),
    }


if __name__ == "__main__":
    key = jax.random.PRNGKey(0)
    pkey, xkey = jax.random.split(key)

    params = init_params(pkey)
    batch = 8
    x = jax.random.normal(xkey, (batch, N_INPUTS), jnp.float32)

    # Jit the wrapper so the pad/cast and the final slice fuse around the pallas_call.
    fwd = jax.jit(lambda xx: torch_nn_forward(xx, params))
    out = jax.block_until_ready(fwd(x))

    # sanity: correct shape, softmax rows sum to 1 (bf16 output quantization ~2e-3),
    # all probabilities in [0, 1]
    assert out.shape == (batch, OUT)
    out_f32 = out.astype(jnp.float32)
    row_sums = jnp.sum(out_f32, axis=1)
    assert bool(jnp.allclose(row_sums, jnp.ones_like(row_sums), atol=5e-3))
    assert bool(jnp.all(out_f32 >= 0.0)) and bool(jnp.all(out_f32 <= 1.0))

    print("KERNEL_OK")
</pallas_src>

<mosaic_0001>
module attributes {stable_mosaic.version = 11 : i64} {
  func.func @mlp_softmax_kernel(%arg0: i32, %arg1: memref<8x896xbf16, #tpu.memory_space<vmem>>, %arg2: memref<896x128xbf16, #tpu.memory_space<vmem>>, %arg3: memref<1x128xf32, #tpu.memory_space<vmem>>, %arg4: memref<128x128xbf16, #tpu.memory_space<vmem>>, %arg5: memref<1x128xf32, #tpu.memory_space<vmem>>, %arg6: memref<128x128xbf16, #tpu.memory_space<vmem>>, %arg7: memref<1x128xf32, #tpu.memory_space<vmem>>, %arg8: memref<8x128xbf16, #tpu.memory_space<vmem>>) attributes {dimension_semantics = [#tpu.dimension_semantics<parallel>], iteration_bounds = array<i64: 1>, scalar_prefetch = 0 : i64, scratch_operands = 0 : i64, tpu.core_type = #tpu.core_type<tc>, window_params = [{transform_indices = @transform_0, window_bounds = array<i64: 8, 896>}, {pipeline_mode = #tpu.pipeline_mode<synchronous>, transform_indices = @transform_1, window_bounds = array<i64: 896, 128>}, {pipeline_mode = #tpu.pipeline_mode<synchronous>, transform_indices = @transform_2, window_bounds = array<i64: 1, 128>}, {pipeline_mode = #tpu.pipeline_mode<synchronous>, transform_indices = @transform_3, window_bounds = array<i64: 128, 128>}, {pipeline_mode = #tpu.pipeline_mode<synchronous>, transform_indices = @transform_4, window_bounds = array<i64: 1, 128>}, {pipeline_mode = #tpu.pipeline_mode<synchronous>, transform_indices = @transform_5, window_bounds = array<i64: 128, 128>}, {pipeline_mode = #tpu.pipeline_mode<synchronous>, transform_indices = @transform_6, window_bounds = array<i64: 1, 128>}, {transform_indices = @transform_7, window_bounds = array<i64: 8, 128>}]} {
    %c0 = arith.constant 0 : index
    %c0_0 = arith.constant 0 : index
    %0 = vector.load %arg1[%c0, %c0_0] : memref<8x896xbf16, #tpu.memory_space<vmem>>, vector<8x896xbf16>
    %c0_1 = arith.constant 0 : index
    %c0_2 = arith.constant 0 : index
    %1 = vector.load %arg2[%c0_1, %c0_2] : memref<896x128xbf16, #tpu.memory_space<vmem>>, vector<896x128xbf16>
    %cst = arith.constant dense<0.000000e+00> : vector<8x128xf32>
    %2 = tpu.matmul %0, %1, %cst {dimension_numbers = #tpu.dot_dimension_numbers<[1], [0], [0], [1], [0, 0, 1, 1], [], []>} : vector<8x896xbf16>, vector<896x128xbf16>, vector<8x128xf32> -> vector<8x128xf32>
    %c0_3 = arith.constant 0 : index
    %c0_4 = arith.constant 0 : index
    %3 = vector.load %arg3[%c0_3, %c0_4] : memref<1x128xf32, #tpu.memory_space<vmem>>, vector<1x128xf32>
    %4 = vector.broadcast %3 : vector<1x128xf32> to vector<8x128xf32>
    %5 = arith.addf %2, %4 : vector<8x128xf32>
    %cst_5 = arith.constant 0.000000e+00 : f32
    %6 = vector.broadcast %cst_5 : f32 to vector<8x128xf32>
    %7 = arith.maximumf %5, %6 : vector<8x128xf32>
    %8 = arith.truncf %7 : vector<8x128xf32> to vector<8x128xbf16>
    %c0_6 = arith.constant 0 : index
    %c0_7 = arith.constant 0 : index
    %9 = vector.load %arg4[%c0_6, %c0_7] : memref<128x128xbf16, #tpu.memory_space<vmem>>, vector<128x128xbf16>
    %cst_8 = arith.constant dense<0.000000e+00> : vector<8x128xf32>
    %10 = tpu.matmul %8, %9, %cst_8 {dimension_numbers = #tpu.dot_dimension_numbers<[1], [0], [0], [1], [0, 0, 1, 1], [], []>} : vector<8x128xbf16>, vector<128x128xbf16>, vector<8x128xf32> -> vector<8x128xf32>
    %c0_9 = arith.constant 0 : index
    %c0_10 = arith.constant 0 : index
    %11 = vector.load %arg5[%c0_9, %c0_10] : memref<1x128xf32, #tpu.memory_space<vmem>>, vector<1x128xf32>
    %12 = vector.broadcast %11 : vector<1x128xf32> to vector<8x128xf32>
    %13 = arith.addf %10, %12 : vector<8x128xf32>
    %cst_11 = arith.constant 0.000000e+00 : f32
    %14 = vector.broadcast %cst_11 : f32 to vector<8x128xf32>
    %15 = arith.maximumf %13, %14 : vector<8x128xf32>
    %16 = arith.truncf %15 : vector<8x128xf32> to vector<8x128xbf16>
    %c0_12 = arith.constant 0 : index
    %c0_13 = arith.constant 0 : index
    %17 = vector.load %arg6[%c0_12, %c0_13] : memref<128x128xbf16, #tpu.memory_space<vmem>>, vector<128x128xbf16>
    %cst_14 = arith.constant dense<0.000000e+00> : vector<8x128xf32>
    %18 = tpu.matmul %16, %17, %cst_14 {dimension_numbers = #tpu.dot_dimension_numbers<[1], [0], [0], [1], [0, 0, 1, 1], [], []>} : vector<8x128xbf16>, vector<128x128xbf16>, vector<8x128xf32> -> vector<8x128xf32>
    %c0_15 = arith.constant 0 : index
    %c0_16 = arith.constant 0 : index
    %19 = vector.load %arg7[%c0_15, %c0_16] : memref<1x128xf32, #tpu.memory_space<vmem>>, vector<1x128xf32>
    %20 = vector.broadcast %19 : vector<1x128xf32> to vector<8x128xf32>
    %21 = arith.addf %18, %20 : vector<8x128xf32>
    %22 = tpu.iota {dimensions = array<i32: 1>} : vector<8x128xi32>
    %c10_i32 = arith.constant 10 : i32
    %23 = vector.broadcast %c10_i32 : i32 to vector<8x128xi32>
    %24 = arith.cmpi slt, %22, %23 : vector<8x128xi32>
    %cst_17 = arith.constant 0xFF800000 : f32
    %25 = vector.broadcast %cst_17 : f32 to vector<8x128xf32>
    %26 = arith.select %24, %21, %25 : vector<8x128xi1>, vector<8x128xf32>
    %cst_18 = arith.constant dense<0xFF800000> : vector<8xf32>
    %27 = vector.multi_reduction <maximumf>, %26, %cst_18 [1] : vector<8x128xf32> to vector<8xf32>
    %28 = vector.shape_cast %27 : vector<8xf32> to vector<8x1xf32>
    %29 = vector.broadcast %28 : vector<8x1xf32> to vector<8x128xf32>
    %30 = arith.subf %26, %29 : vector<8x128xf32>
    %31 = math.exp %30 : vector<8x128xf32>
    %cst_19 = arith.constant dense<0.000000e+00> : vector<8xf32>
    %32 = vector.multi_reduction <add>, %31, %cst_19 [1] : vector<8x128xf32> to vector<8xf32>
    %33 = vector.shape_cast %32 : vector<8xf32> to vector<8x1xf32>
    %34 = tpu.reciprocal %33 : vector<8x1xf32> -> vector<8x1xf32>
    %35 = vector.broadcast %34 : vector<8x1xf32> to vector<8x128xf32>
    %36 = arith.mulf %31, %35 : vector<8x128xf32>
    %37 = arith.truncf %36 : vector<8x128xf32> to vector<8x128xbf16>
    %c0_20 = arith.constant 0 : index
    %c0_21 = arith.constant 0 : index
    %38 = vector.load %arg8[%c0_20, %c0_21] : memref<8x128xbf16, #tpu.memory_space<vmem>>, vector<8x128xbf16>
    tpu.vector_store %arg8[%c0_20, %c0_21], %37 {strides = array<i32>} : memref<8x128xbf16, #tpu.memory_space<vmem>>, vector<8x128xbf16>,
    return
  }
  func.func @transform_0(%arg0: i32) -> (i32, i32) {
    %c0_i32 = arith.constant 0 : i32
    %c0_i32_0 = arith.constant 0 : i32
    return %arg0, %c0_i32 : i32, i32
  }
  func.func @transform_1(%arg0: i32) -> (i32, i32) {
    %c0_i32 = arith.constant 0 : i32
    %c0_i32_0 = arith.constant 0 : i32
    %c0_i32_1 = arith.constant 0 : i32
    return %c0_i32, %c0_i32_0 : i32, i32
  }
  func.func @transform_2(%arg0: i32) -> (i32, i32) {
    %c0_i32 = arith.constant 0 : i32
    %c0_i32_0 = arith.constant 0 : i32
    %c0_i32_1 = arith.constant 0 : i32
    return %c0_i32, %c0_i32_0 : i32, i32
  }
  func.func @transform_3(%arg0: i32) -> (i32, i32) {
    %c0_i32 = arith.constant 0 : i32
    %c0_i32_0 = arith.constant 0 : i32
    %c0_i32_1 = arith.constant 0 : i32
    return %c0_i32, %c0_i32_0 : i32, i32
  }
  func.func @transform_4(%arg0: i32) -> (i32, i32) {
    %c0_i32 = arith.constant 0 : i32
    %c0_i32_0 = arith.constant 0 : i32
    %c0_i32_1 = arith.constant 0 : i32
    return %c0_i32, %c0_i32_0 : i32, i32
  }
  func.func @transform_5(%arg0: i32) -> (i32, i32) {
    %c0_i32 = arith.constant 0 : i32
    %c0_i32_0 = arith.constant 0 : i32
    %c0_i32_1 = arith.constant 0 : i32
    return %c0_i32, %c0_i32_0 : i32, i32
  }
  func.func @transform_6(%arg0: i32) -> (i32, i32) {
    %c0_i32 = arith.constant 0 : i32
    %c0_i32_0 = arith.constant 0 : i32
    %c0_i32_1 = arith.constant 0 : i32
    return %c0_i32, %c0_i32_0 : i32, i32
  }
  func.func @transform_7(%arg0: i32) -> (i32, i32) {
    %c0_i32 = arith.constant 0 : i32
    %c0_i32_0 = arith.constant 0 : i32
    return %arg0, %c0_i32 : i32, i32
  }
}

</mosaic_0001>

<bundles_post_ra>
// kernel: _lambda_.1
= control target key start
LH: loop header
LB: loop body
LE: loop exit
PB: predicated region body
PF: predicated region fallthrough
CT: control target
= control target key end

     0   :  { %12 = vsyncpa [#allocation3], 0  ;;  %s1461_s0 = inlined_call_operand.vmem [shape: bf16[8,896], index: 0, kind: input, shape index: {}]   ;;  %s1462_s1 = inlined_call_operand.hbm [shape: bf16[896,128], index: 1, kind: input, shape index: {}]   ;;  %s1463_s2 = inlined_call_operand.vmem [shape: f32[1,128], index: 2, kind: input, shape index: {}]   ;;  %s1464_s3 = inlined_call_operand.vmem [shape: bf16[128,128], index: 3, kind: input, shape index: {}]   ;;  %s1465_s4 = inlined_call_operand.vmem [shape: f32[1,128], index: 4, kind: input, shape index: {}]   ;;  %s1466_s5 = inlined_call_operand.vmem [shape: bf16[128,128], index: 5, kind: input, shape index: {}]   ;;  %s1467_s6 = inlined_call_operand.vmem [shape: f32[1,128], index: 6, kind: input, shape index: {}]   ;;  %s1468_s7 = inlined_call_operand.hbm [shape: bf16[8,128], index: 7, kind: output, shape index: {}]  }
   0x1   :  { %13 = vsyncpa [#allocation4], 0  ;;  %s1310_s24 = smov [#allocation2]  }
   0x2   :  { %s21_s25 = sshll.u32 %s1310_s24, 4  ;;  %s22_s25 = int_to_ptr.vmem [resolvable:$true] %s21_s25 }
   0x3   :  { %s1274_s26 = scalar_lea.vmem %s22_s25, 7168  ;;  %p1279_p1 = scmp.lt.s32.totalorder %s22_s25, %s22_s25 }
   0x4   :  { %p1275_p0 = scmp.ne.s32.totalorder %s22_s25, %s1274_s26  ;;  %p1280_p2 = scmp.lt.s32.totalorder %s1274_s26, %s1274_s26 }
   0x6   :  { %p1281_p3 = por %p1280_p2, %p1279_p1 }
   0x8   :  { %p1282_p4 = pnand %p1281_p3, %p1275_p0 }
   0xa   :  { %1285 = shalt.err (!%p1282_p4)
}
   0xb   :  { %s1311_s27 = smov 64   ;;  %s1312_s28 = smov 4  }
   0xc   :  { %27 = dma.hbm_to_vmem [thread:$0]  %s1462_s1, 7168, %s22_s25, [#allocation3], %s1311_s27, %s1311_s27, %s1312_s28  }
   0xd   :  { %1306 = dma.done.wait [#allocation3], 7168  }
   0xe   :  { %1307 = vsyncadd [#allocation3], 4294960128  ;;  %v1183_v0 = vld [vmem:[#allocation2 + $0x78] sm:$0xff]   ;;  %v1187_v4 = vld [vmem:[#allocation2 + $0x70] sm:$0xff]   ;;  %v1313_v39 = vmov 0.0   ;;  %vm1314_vm0 = vmmov 0  }
   0xf   :  { %v1184_v1 = vld [vmem:[#allocation2 + $0xf8] sm:$0xff]   ;;  %1024 = vmatprep.subr.bf16.mxu0 %v1183_v0  ;;  %v1188_v5 = vld [vmem:[#allocation2 + $0xf0] sm:$0xff]   ;;  %v1191_v8 = vld [vmem:[#allocation2 + $0x68] sm:$0xff]  }
  0x10   :  { %v1185_v2 = vld [vmem:[#allocation2 + $0x38] sm:$0xff]   ;;  %1046 = vmatprep.subr.bf16.mxu1 %v1184_v1  ;;  %v1189_v6 = vld [vmem:[#allocation2 + $0x30] sm:$0xff]   ;;  %v1192_v9 = vld [vmem:[#allocation2 + $0xe8] sm:$0xff]  }
  0x11   :  { %v1186_v3 = vld [vmem:[#allocation2 + $0xb8] sm:$0xff]   ;;  %1025 = vmatpush3.bf16.msra.mxu0 %v1185_v2  ;;  %v1190_v7 = vld [vmem:[#allocation2 + $0xb0] sm:$0xff]   ;;  %v1193_v10 = vld [vmem:[#allocation2 + $0x28] sm:$0xff]  }
  0x12   :  { %1047 = vmatpush3.bf16.msra.mxu1 %v1186_v3  ;;  %1026 = vmatprep.subr.bf16.mxu0 %v1187_v4  ;;  %v1194_v11 = vld [vmem:[#allocation2 + $0xa8] sm:$0xff]   ;;  %v1195_v12 = vld [vmem:[#allocation2 + $0x60] sm:$0xff]   ;;  %v1199_v16 = vld [vmem:[#allocation2 + $0x58] sm:$0xff]  }
  0x13   :  { %1048 = vmatprep.subr.bf16.mxu1 %v1188_v5  ;;  %v1196_v13 = vld [vmem:[#allocation2 + $0xe0] sm:$0xff]   ;;  %v1200_v17 = vld [vmem:[#allocation2 + $0xd8] sm:$0xff]   ;;  %v1203_v20 = vld [vmem:[#allocation2 + $0x50] sm:$0xff]  }
  0x14   :  { %v1197_v14 = vld [vmem:[#allocation2 + $0x20] sm:$0xff]   ;;  %v1201_v18 = vld [vmem:[#allocation2 + $0x18] sm:$0xff]   ;;  %v1204_v21 = vld [vmem:[#allocation2 + $0xd0] sm:$0xff]  }
  0x15   :  { %1027 = vmatpush3.bf16.msra.mxu0 %v1189_v6  ;;  %v1198_v15 = vld [vmem:[#allocation2 + $0xa0] sm:$0xff]   ;;  %v1202_v19 = vld [vmem:[#allocation2 + $0x98] sm:$0xff]   ;;  %v1205_v22 = vld [vmem:[#allocation2 + $0x10] sm:$0xff]  }
  0x16   :  { %1049 = vmatpush3.bf16.msra.mxu1 %v1190_v7  ;;  %1028 = vmatprep.subr.bf16.mxu0 %v1191_v8  ;;  %v1206_v23 = vld [vmem:[#allocation2 + $0x90] sm:$0xff]   ;;  %v1207_v24 = vld [vmem:[#allocation2 + $0x48] sm:$0xff]   ;;  %v1211_v28 = vld [vmem:[#allocation2 + $0x40] sm:$0xff]  }
  0x17   :  { %1050 = vmatprep.subr.bf16.mxu1 %v1192_v9  ;;  %v1208_v25 = vld [vmem:[#allocation2 + $0xc8] sm:$0xff]   ;;  %v1212_v29 = vld [vmem:[#allocation2 + $0xc0] sm:$0xff]   ;;  %v1219_v38 = vld [vmem:[#allocation2 + $0x178] sm:$0xff]  }
  0x18   :  { %v1209_v26 = vld [vmem:[#allocation2 + $0x8] sm:$0xff]   ;;  %v1213_v30 = vld [vmem:[#allocation2] sm:$0xff]   ;;  %v1220_v40 = vld [vmem:[#allocation2 + $0x138] sm:$0xff]  }
  0x19   :  { %1029 = vmatpush3.bf16.msra.mxu0 %v1193_v10  ;;  %v1210_v27 = vld [vmem:[#allocation2 + $0x88] sm:$0xff]   ;;  %v1214_v31 = vld [vmem:[#allocation2 + $0x80] sm:$0xff]   ;;  %v1221_v41 = vld [vmem:[#allocation2 + $0x1b8] sm:$0xff]  }
  0x1a   :  { %1051 = vmatpush3.bf16.msra.mxu1 %v1194_v11  ;;  %1030 = vmatprep.subr.bf16.mxu0 %v1195_v12  ;;  %v42_v32 = vld [vmem:[%s1461_s0] sm:$0xff]  ;;  %v43_v33 = vld [vmem:[%s1461_s0 + $0x8] sm:$0xff]  ;;  %v1222_v42 = vld [vmem:[#allocation2 + $0x170] sm:$0xff]  }
  0x1b   :  { %1052 = vmatprep.subr.bf16.mxu1 %v1196_v13  ;;  %v943_v34 = vcombine.low %v42_v32, %v42_v32  ;;  %v944_v35 = vcombine.high %v42_v32, %v42_v32  ;;  %v945_v36 = vcombine.low %v43_v33, %v43_v33  ;;  %v946_v37 = vcombine.high %v43_v33, %v43_v33  ;;  %v1223_v43 = vld [vmem:[#allocation2 + $0x130] sm:$0xff]   ;;  %v1225_v45 = vld [vmem:[#allocation2 + $0x168] sm:$0xff]   ;;  %v1228_v48 = vld [vmem:[#allocation2 + $0x160] sm:$0xff]  }
  0x1c   :  { %v1224_v44 = vld [vmem:[#allocation2 + $0x1b0] sm:$0xff]   ;;  %v1226_v46 = vld [vmem:[#allocation2 + $0x128] sm:$0xff]   ;;  %v1229_v49 = vld [vmem:[#allocation2 + $0x120] sm:$0xff]  }
  0x1d   :  { %1031 = vmatpush3.bf16.msra.mxu0 %v1197_v14  ;;  %558 = vmatprep.mubr.bf16.mxu0 %v944_v35  ;;  %v1227_v47 = vld [vmem:[#allocation2 + $0x1a8] sm:$0xff]   ;;  %v1230_v50 = vld [vmem:[#allocation2 + $0x1a0] sm:$0xff]   ;;  %v1231_v51 = vld [vmem:[#allocation2 + $0x158] sm:$0xff]  }
  0x1e   :  { %1053 = vmatpush3.bf16.msra.mxu1 %v1198_v15  ;;  %1032 = vmatprep.subr.bf16.mxu0 %v1199_v16  ;;  %v1232_v52 = vld [vmem:[#allocation2 + $0x118] sm:$0xff]   ;;  %v1234_v54 = vld [vmem:[#allocation2 + $0x150] sm:$0xff]   ;;  %v1237_v57 = vld [vmem:[#allocation2 + $0x148] sm:$0xff]  }
  0x1f   :  { %1054 = vmatprep.subr.bf16.mxu1 %v1200_v17  ;;  %598 = vmatprep.mubr.bf16.mxu1 %v946_v37  ;;  %v1233_v53 = vld [vmem:[#allocation2 + $0x198] sm:$0xff]   ;;  %v1235_v55 = vld [vmem:[#allocation2 + $0x110] sm:$0xff]   ;;  %v1238_v58 = vld [vmem:[#allocation2 + $0x108] sm:$0xff]  }
  0x20   :  { %v1236_v56 = vld [vmem:[#allocation2 + $0x190] sm:$0xff]   ;;  %v1239_v59 = vld [vmem:[#allocation2 + $0x188] sm:$0xff]   ;;  %v1240_v61 = vld [vmem:[#allocation2 + $0x140] sm:$0xff]  }
  0x21   :  { %1033 = vmatpush3.bf16.msra.mxu0 %v1201_v18  ;;  %v44_v60 = vld [vmem:[%s1461_s0 + $0x10] sm:$0xff]  ;;  %v1241_v63 = vld [vmem:[#allocation2 + $0x100] sm:$0xff]   ;;  %v1245_v1 = vld [vmem:[%s1461_s0 + $0x18] ss:$0 sps:$4 sm:$0xff]  }
  0x22   :  { %1055 = vmatpush3.bf16.msra.mxu1 %v1202_v19  ;;  %1034 = vmatprep.subr.bf16.mxu0 %v1203_v20  ;;  %v948_v62 = vcombine.high %v44_v60, %v44_v60  ;;  %v1242_v0 = vld [vmem:[#allocation2 + $0x180] sm:$0xff]   ;;  %v947_v2 = vcombine.low %v44_v60, %v44_v60  ;;  %v1246_v3 = vld [vmem:[%s1464_s3 + $0x38] sm:$0xff]   ;;  %v1247_v4 = vld [vmem:[%s1464_s3 + $0x30] sm:$0xff]  }
  0x23   :  { %1056 = vmatprep.subr.bf16.mxu1 %v1204_v21  ;;  %v1248_v5 = vld [vmem:[%s1464_s3 + $0x28] sm:$0xff]   ;;  %v1249_v6 = vld [vmem:[%s1464_s3 + $0x20] sm:$0xff]   ;;  %v1250_v7 = vld [vmem:[%s1464_s3 + $0x18] sm:$0xff]  }
  0x24   :  { %v1251_v8 = vld [vmem:[%s1464_s3 + $0x10] sm:$0xff]   ;;  %v1252_v9 = vld [vmem:[%s1464_s3 + $0x8] sm:$0xff]   ;;  %v1253_v10 = vld [vmem:[%s1464_s3] sm:$0xff]  }
  0x25   :  { %1035 = vmatpush3.bf16.msra.mxu0 %v1205_v22  ;;  %v1254_v11 = vld [vmem:[%s1466_s5 + $0x38] sm:$0xff]   ;;  %v1255_v12 = vld [vmem:[%s1466_s5 + $0x30] sm:$0xff]   ;;  %v1256_v13 = vld [vmem:[%s1466_s5 + $0x28] sm:$0xff]  }
  0x26   :  { %1057 = vmatpush3.bf16.msra.mxu1 %v1206_v23  ;;  %1036 = vmatprep.subr.bf16.mxu0 %v1207_v24  ;;  %v1257_v14 = vld [vmem:[%s1466_s5 + $0x20] sm:$0xff]   ;;  %v1258_v15 = vld [vmem:[%s1466_s5 + $0x18] sm:$0xff]   ;;  %v1259_v16 = vld [vmem:[%s1466_s5 + $0x10] sm:$0xff]  }
  0x27   :  { %1058 = vmatprep.subr.bf16.mxu1 %v1208_v25 }
  0x29   :  { %1037 = vmatpush3.bf16.msra.mxu0 %v1209_v26  ;;  %v942_v26 = vld [vmem:[%s1463_s2] ss:$0 sm:$0xff] }
  0x2a   :  { %1059 = vmatpush3.bf16.msra.mxu1 %v1210_v27  ;;  %1038 = vmatprep.subr.bf16.mxu0 %v1211_v28 }
  0x2b   :  { %1060 = vmatprep.subr.bf16.mxu1 %v1212_v29 }
  0x2d   :  { %1039 = vmatpush3.bf16.msra.mxu0 %v1213_v30 }
  0x2e   :  { %1061 = vmatpush3.bf16.msra.mxu1 %v1214_v31  ;;  %1068 = vmatprep.subr.bf16.mxu0 %v1219_v38 }
  0x2f   :  { %1117 = vmatprep.subr.bf16.mxu1 %v1313_v39 }
  0x30   :  { %559 = vmatmul.mubr.bf16.vlgmr.msra.gmra.mxu0 %v943_v34 }
  0x31   :  { %599 = vmatmul.mubr.bf16.vlgmr.msra.gmra.mxu1 %v945_v36  ;;  %1069 = vmatpush3.bf16.msra.mxu0 %v1220_v40 }
  0x32   :  { %1118 = vmatpush3.bf16.msra.mxu1 %v1221_v41  ;;  %1070 = vmatprep.subr.bf16.mxu0 %v1222_v42 }
  0x33   :  { %1119 = vmatprep.subr.bf16.mxu1 %v1313_v39  ;;  %1133 = vmatprep.mubr.msk.bf16.mxu1 %vm1314_vm0, %v1313_v39 }
  0x34   :  { %638 = vmatprep.mubr.bf16.mxu0 %v948_v62 }
  0x35   :  { %1071 = vmatpush3.bf16.msra.mxu0 %v1223_v43 }
  0x36   :  { %1120 = vmatpush3.bf16.msra.mxu1 %v1224_v44  ;;  %1072 = vmatprep.subr.bf16.mxu0 %v1225_v45  ;;  %v1260_v44 = vld [vmem:[%s1466_s5 + $0x8] sm:$0xff]   ;;  %v1261_v45 = vld [vmem:[%s1466_s5] sm:$0xff]  }
  0x37   :  { %1121 = vmatprep.subr.bf16.mxu1 %v1313_v39 }
  0x39   :  { %1073 = vmatpush3.bf16.msra.mxu0 %v1226_v46  ;;  %v1006_v46 = vld [vmem:[%s1465_s4] ss:$0 sm:$0xff]  ;;  %s1315_s4 = smov [#allocation5]  }
  0x3a   :  { %1122 = vmatpush3.bf16.msra.mxu1 %v1227_v47  ;;  %1074 = vmatprep.subr.bf16.mxu0 %v1228_v48  ;;  %s933_s5 = sshll.u32 %s1315_s4, 4  ;;  %s934_s5 = int_to_ptr.vmem [resolvable:$true] %s933_s5 }
  0x3b   :  { %1123 = vmatprep.subr.bf16.mxu1 %v1313_v39  ;;  %p1291_p6 = scmp.lt.s32.totalorder %s934_s5, %s934_s5 }
  0x3d   :  { %1075 = vmatpush3.bf16.msra.mxu0 %v1229_v49 }
  0x3e   :  { %1124 = vmatpush3.bf16.msra.mxu1 %v1230_v50  ;;  %1076 = vmatprep.subr.bf16.mxu0 %v1231_v51 }
  0x3f   :  { %1125 = vmatprep.subr.bf16.mxu1 %v1313_v39 }
  0x41   :  { %1077 = vmatpush3.bf16.msra.mxu0 %v1232_v52 }
  0x42   :  { %1126 = vmatpush3.bf16.msra.mxu1 %v1233_v53  ;;  %1078 = vmatprep.subr.bf16.mxu0 %v1234_v54  ;;  %v912_v54 = vlaneseq }
  0x43   :  { %1127 = vmatprep.subr.bf16.mxu1 %v1313_v39 }
  0x45   :  { %1079 = vmatpush3.bf16.msra.mxu0 %v1235_v55  ;;  %v913_v55 = vand.u32 127, %v912_v54 }
  0x46   :  { %1128 = vmatpush3.bf16.msra.mxu1 %v1236_v56  ;;  %1080 = vmatprep.subr.bf16.mxu0 %v1237_v57 }
  0x47   :  { %1129 = vmatprep.subr.bf16.mxu1 %v1313_v39  ;;  %vm914_vm1 = vcmp.lt.s32.totalorder %v913_v55, 10 }
  0x49   :  { %1081 = vmatpush3.bf16.msra.mxu0 %v1238_v58 }
  0x4a   :  { %1130 = vmatpush3.bf16.msra.mxu1 %v1239_v59  ;;  %1082 = vmatprep.subr.bf16.mxu0 %v1240_v61 }
  0x4b   :  { %1131 = vmatprep.subr.bf16.mxu1 %v1313_v39 }
  0x4d   :  { %1083 = vmatpush3.bf16.msra.mxu0 %v1241_v63 }
  0x4e   :  { %1132 = vmatpush3.bf16.msra.mxu1 %v1242_v0  ;;  %1137 = vmatprep.subr.bf16.mxu0 %v1313_v39 }
  0x4f   :  { %1157 = vmatprep.subr.bf16.mxu1 %v1313_v39 }
  0x50   :  { %639 = vmatmul.mubr.bf16.vlgmr.msra.gmra.mxu0 %v947_v2 }
  0x51   :  { %1134 = vmatmul.mubr.bf16.vlgmr.msra.gmra.mxu1 %v1245_v1  ;;  %1153 = vmatprep.mubr.msk.bf16.mxu0 %vm1314_vm0, %v1313_v39 }
  0x52   :  { %1173 = vmatprep.mubr.msk.bf16.mxu1 %vm1314_vm0, %v1313_v39  ;;  %1138 = vmatpush3.bf16.msra.mxu0 %v1246_v3 }
  0x53   :  { %1139 = vmatprep.subr.bf16.mxu0 %v1313_v39  ;;  %1158 = vmatpush3.bf16.msra.mxu1 %v1254_v11 }
  0x54   :  { %1159 = vmatprep.subr.bf16.mxu1 %v1313_v39 }
  0x56   :  { %1140 = vmatpush3.bf16.msra.mxu0 %v1247_v4 }
  0x57   :  { %1141 = vmatprep.subr.bf16.mxu0 %v1313_v39  ;;  %1160 = vmatpush3.bf16.msra.mxu1 %v1255_v12 }
  0x58   :  { %1161 = vmatprep.subr.bf16.mxu1 %v1313_v39 }
  0x5a   :  { %1142 = vmatpush3.bf16.msra.mxu0 %v1248_v5 }
  0x5b   :  { %1143 = vmatprep.subr.bf16.mxu0 %v1313_v39  ;;  %1162 = vmatpush3.bf16.msra.mxu1 %v1256_v13 }
  0x5c   :  { %1163 = vmatprep.subr.bf16.mxu1 %v1313_v39 }
  0x5e   :  { %1144 = vmatpush3.bf16.msra.mxu0 %v1249_v6 }
  0x5f   :  { %1145 = vmatprep.subr.bf16.mxu0 %v1313_v39  ;;  %1164 = vmatpush3.bf16.msra.mxu1 %v1257_v14 }
  0x60   :  { %1165 = vmatprep.subr.bf16.mxu1 %v1313_v39 }
  0x62   :  { %1146 = vmatpush3.bf16.msra.mxu0 %v1250_v7 }
  0x63   :  { %1147 = vmatprep.subr.bf16.mxu0 %v1313_v39  ;;  %1166 = vmatpush3.bf16.msra.mxu1 %v1258_v15 }
  0x64   :  { %1167 = vmatprep.subr.bf16.mxu1 %v1313_v39 }
  0x66   :  { %1148 = vmatpush3.bf16.msra.mxu0 %v1251_v8 }
  0x67   :  { %1149 = vmatprep.subr.bf16.mxu0 %v1313_v39  ;;  %1168 = vmatpush3.bf16.msra.mxu1 %v1259_v16 }
  0x68   :  { %1169 = vmatprep.subr.bf16.mxu1 %v1313_v39 }
  0x6a   :  { %1150 = vmatpush3.bf16.msra.mxu0 %v1252_v9 }
  0x6b   :  { %1151 = vmatprep.subr.bf16.mxu0 %v1313_v39  ;;  %1170 = vmatpush3.bf16.msra.mxu1 %v1260_v44 }
  0x6c   :  { %1171 = vmatprep.subr.bf16.mxu1 %v1313_v39  ;;  %v1015_v39 = vld [vmem:[%s1467_s6] ss:$0 sm:$0xff]  ;;  %s1286_s6 = scalar_lea.vmem %s934_s5, 64 }
  0x6d   :  { %p1287_p5 = scmp.ne.s32.totalorder %s934_s5, %s1286_s6  ;;  %p1292_p7 = scmp.lt.s32.totalorder %s1286_s6, %s1286_s6 }
  0x6e   :  { %1152 = vmatpush3.bf16.msra.mxu0 %v1253_v10 }
  0x6f   :  { %1172 = vmatpush3.bf16.msra.mxu1 %v1261_v45  ;;  %p1293_p8 = por %p1292_p7, %p1291_p6 }
  0x71   :  { %p1294_p9 = pnand %p1293_p8, %p1287_p5 }
  0xf0   :  { %v1040_v17 = vpop.f32.mrf.mxu0 }
  0xf1   :  { %v1062_v18 = vpop.f32.mrf.mxu1 }
  0xf2   :  { %v1041_v19 = vpop.f32.mrf.mxu0 }
  0xf3   :  { %v1063_v20 = vpop.f32.mrf.mxu1  ;;  %v1042_v25 = vadd.f32 %v1041_v19, %v1040_v17 }
  0xf4   :  { %v1043_v21 = vpop.f32.mrf.mxu0  ;;  %v1064_v28 = vadd.f32 %v1063_v20, %v1062_v18 }
  0xf5   :  { %v1065_v22 = vpop.f32.mrf.mxu1  ;;  %v561_v27 = vadd.f32 %v1042_v25, %v942_v26 }
  0xf6   :  { %v1044_v23 = vpop.f32.mrf.mxu0 }
  0xf7   :  { %v1066_v24 = vpop.f32.mrf.mxu1  ;;  %v601_v32 = vadd.f32 %v1064_v28, %v561_v27 }
 0x110   :  { %v1084_v29 = vpop.f32.mrf.mxu0 }
 0x111   :  { %v680_v30 = vpop.f32.mrf.mxu1 }
 0x112   :  { %v1085_v31 = vpop.f32.mrf.mxu0 }
 0x113   :  { %v1086_v33 = vadd.f32 %v1085_v31, %v1084_v29  ;;  %v1135_v34 = vpop.f32.mrf.mxu1 }
 0x114   :  { %v1087_v35 = vpop.f32.mrf.mxu0 }
 0x115   :  { %v641_v36 = vadd.f32 %v1086_v33, %v601_v32  ;;  %v683_v37 = vpop.f32.mrf.mxu1 }
 0x116   :  { %v1088_v38 = vpop.f32.mrf.mxu0 }
 0x117   :  { %v681_v40 = vadd.f32 %v680_v30, %v641_v36  ;;  %v1136_v41 = vpop.f32.mrf.mxu1 }
 0x119   :  { %v686_v42 = vmax.f32 %v681_v40, 0.0 }
 0x11b   :  { %v687_v43 = vpack.c.bf16 %v686_v42, %v686_v42 }
 0x11d   :  { %1154 = vmatmul.mubr.bf16.vlgmr.msra.gmra.mxu0 %v687_v43 }
 0x1dd   :  { %v793_v47 = vpop.f32.mrf.mxu0 }
 0x1de   :  { %v794_v48 = vadd.f32 %v1006_v46, %v793_v47 }
 0x1df   :  { %v1155_v49 = vpop.f32.mrf.mxu0 }
 0x1e0   :  { %v799_v50 = vmax.f32 %v794_v48, 0.0 }
 0x1e1   :  { %v796_v51 = vpop.f32.mrf.mxu0 }
 0x1e2   :  { %v800_v52 = vpack.c.bf16 %v799_v50, %v799_v50 }
 0x1e3   :  { %v1156_v53 = vpop.f32.mrf.mxu0 }
 0x1e4   :  { %1174 = vmatmul.mubr.bf16.vlgmr.msra.gmra.mxu1 %v800_v52 }
 0x2a4   :  { %v906_v56 = vpop.f32.mrf.mxu1 }
 0x2a5   :  { %v907_v57 = vadd.f32 %v1015_v39, %v906_v56 }
 0x2a6   :  { %v1175_v58 = vpop.f32.mrf.mxu1 }
 0x2a7   :  { %v915_v59 = vsel %vm914_vm1, %v907_v57, -inf }
 0x2a8   :  { %916 = vmax.xlane.f32.xlu0 %v915_v59  ;;  %v909_v60 = vpop.f32.mrf.mxu1 }
 0x2aa   :  { %v1176_v61 = vpop.f32.mrf.mxu1 }
 0x331   :  { %v917_v62 = vpop.xlane.xlu0 %916 }
 0x332   :  { %v918_v63 = vsub.f32 %v915_v59, %v917_v62 }
 0x334   :  { %v919_v0 = vmul.f32 1.442695, %v918_v63 }
 0x336   :  { %1262 = vpow2.f32 %v919_v0 }
 0x343   :  { %v1263_v1 = vpop.eup %1262 }
 0x344   :  { %921 = vadd.xlane.f32.xlu0 %v1263_v1 }
 0x3cd   :  { %v922_v2 = vpop.xlane.xlu0 %921 }
 0x3ce   :  { %1264 = vrcp.f32 %v922_v2 }
 0x3db   :  { %v1265_v3 = vpop.eup %1264 }
 0x3dc   :  { %v924_v4 = vmul.f32 %v1265_v3, %v1263_v1 }
 0x3de   :  { %v925_v5 = vpack.c.bf16 %v924_v4, %v924_v4 }
 0x3e0   :  { %926 = vst [vmem:[#allocation5] sm:$0xf] %v925_v5 }
 0x3e1   :  { %1297 = shalt.err (!%p1294_p9)
}
 0x3e2   :  { %936 = dma.vmem_to_hbm [thread:$0]  %s934_s5, 64, %s1468_s7, [#allocation4]  }
 0x3e3   :  { %1308 = dma.done.wait [#allocation4], 64  }
 0x3e4   :  { %1309 = vsyncadd [#allocation4], 4294967232 }
 0x3e5   :  { %940 = vsyncpa [#allocation3], 1 }
 0x3e6   :  { %941 = vsyncpa [#allocation4], 1 }

</bundles_post_ra>
